<compile_context>
chip_gen: v5e
topology: v5e:2x2
jax: 0.10.0
libtpu: 0.0.40
codegen_flags: <defaults>
</compile_context>

<pallas_src>
import jax
import jax.numpy as jnp
from jax.experimental import pallas as pl
from jax.experimental.pallas import tpu as pltpu

_LANE = 512  # lane-dense last dim: large multiple of the 128-lane vreg width


def _round_up(x: int, m: int) -> int:
    return ((x + m - 1) // m) * m


def _sublane_multiple(dtype) -> int:
    """Minimum sublane tiling for the dtype (packed along sublanes)."""
    itemsize = jnp.dtype(dtype).itemsize
    if itemsize >= 4:
        return 8
    if itemsize == 2:
        return 16
    return 32


def _tile_target_bytes() -> int:
    """Per-tile byte target, generation-dependent.

    v5e: 16 MiB default scoped VMEM -> ~3 MiB tiles (4 live tiles <= 12 MiB).
    v6e / v7x: 32 MiB scoped default -> ~4 MiB tiles (4 live tiles <= 16 MiB).
    """
    try:
        kind = jax.devices()[0].device_kind.lower()
    except Exception:  # pragma: no cover - defensive; fall back to safe size
        kind = ""
    if "v5" in kind:
        return 3 * 1024 * 1024
    return 4 * 1024 * 1024


def _choose_tile_rows(rows: int, lane: int, dtype) -> int:
    """Sublane tile height (multiple of the dtype's sublane packing)."""
    sub = _sublane_multiple(dtype)
    itemsize = jnp.dtype(dtype).itemsize
    target = _tile_target_bytes()
    tm = max(sub, (target // (lane * itemsize)) // sub * sub)
    # Ensure >= 2 grid steps when the input is big enough, so v7x can shard
    # the "parallel" grid axis across its two TensorCores.
    if rows >= 2 * sub:
        tm = min(tm, _round_up(pl.cdiv(rows, 2), sub))
    # Never exceed the (sublane-rounded) extent of the array.
    tm = min(tm, _round_up(rows, sub))
    return max(sub, tm)


def _threshold_kernel(thr_ref, x_ref, o_ref):
    # thr_ref: SMEM (1,) f32 scalar; x_ref / o_ref: (tm, LANE) VMEM tiles.
    thr = thr_ref[0]  # read the SMEM scalar once per tile
    o_ref[...] = (x_ref[...] - thr).astype(o_ref.dtype)


def threshold_layer(x: jax.Array, threshold: jax.Array, *, donate_x: bool = False) -> jax.Array:
    """Computes x - threshold (threshold is a shape-(1,) learnable parameter).

    Set donate_x=True only if the caller no longer needs x (enables output
    buffer aliasing onto the input).
    """
    assert threshold.shape == (1,)
    assert jnp.issubdtype(x.dtype, jnp.floating), "expected floating-point input"
    orig_shape = x.shape
    n = x.size

    # --- layout plumbing: lane-dense 2D slab, minimal padding ---------------
    rows = pl.cdiv(n, _LANE)
    padded_n = rows * _LANE
    needs_pad = padded_n != n

    flat = x.reshape(-1)
    if needs_pad:
        flat = jnp.pad(flat, (0, padded_n - n))  # only to the next LANE multiple
    x2d = flat.reshape(rows, _LANE)

    tm = _choose_tile_rows(rows, _LANE, x.dtype)
    grid = (pl.cdiv(rows, tm),)  # Pallas handles the partial boundary tile

    thr_f32 = threshold.astype(jnp.float32)  # 32-bit scalar in SMEM

    out2d = pl.pallas_call(
        _threshold_kernel,
        out_shape=jax.ShapeDtypeStruct((rows, _LANE), x.dtype),
        grid=grid,
        in_specs=[
            # scalar parameter: whole (1,) array resident in SMEM
            pl.BlockSpec((1,), lambda i: (0,),
                         memory_space=pltpu.MemorySpace.SMEM),
            # lane-dense input tile, auto double-buffered
            pl.BlockSpec((tm, _LANE), lambda i: (i, 0)),
        ],
        out_specs=pl.BlockSpec((tm, _LANE), lambda i: (i, 0)),
        compiler_params=pltpu.CompilerParams(
            dimension_semantics=("parallel",)),
        input_output_aliases=({1: 0} if donate_x else {}),
    )(thr_f32, x2d)

    # undo the layout plumbing (no-op slice on the aligned fast path)
    out = out2d.reshape(-1)
    if needs_pad:
        out = out[:n]
    return out.reshape(orig_shape)


if __name__ == "__main__":
    key = jax.random.PRNGKey(0)
    k_thr, k_x, k_y = jax.random.split(key, 3)

    # Parameter init mirroring torch.FloatTensor(1).uniform_(0.1, 0.9)
    threshold = jax.random.uniform(k_thr, (1,), jnp.float32, minval=0.1, maxval=0.9)

    # Example input (batch=2, channels=4, spatial=16x16), NCHW like PyTorch.
    # 2*4*16*16 = 2048 elements -> LANE-aligned fast path (no pad / no slice).
    x = jax.random.normal(k_x, (2, 4, 16, 16), jnp.float32)
    out = threshold_layer(x, threshold)
    jax.block_until_ready(out)
    ref = x - threshold[0]
    assert out.shape == x.shape and out.dtype == x.dtype
    assert jnp.allclose(out, ref, atol=1e-6), "mismatch vs reference (aligned path)"

    # Ragged shape exercises the minimal-padding / partial-tile path.
    y = jax.random.normal(k_y, (3, 5, 7), jnp.float32)
    out_y = threshold_layer(y, threshold)
    jax.block_until_ready(out_y)
    ref_y = y - threshold[0]
    assert out_y.shape == y.shape and out_y.dtype == y.dtype
    assert jnp.allclose(out_y, ref_y, atol=1e-6), "mismatch vs reference (ragged path)"

    print("KERNEL_OK")
</pallas_src>

<mosaic_0001>
module attributes {stable_mosaic.version = 11 : i64} {
  func.func @_threshold_kernel(%arg0: i32, %arg1: memref<1xf32, #tpu.memory_space<smem>>, %arg2: memref<8x512xf32, #tpu.memory_space<vmem>>, %arg3: memref<8x512xf32, #tpu.memory_space<vmem>>) attributes {dimension_semantics = [#tpu.dimension_semantics<parallel>], iteration_bounds = array<i64: 1>, scalar_prefetch = 0 : i64, scratch_operands = 0 : i64, tpu.core_type = #tpu.core_type<tc>, window_params = [{transform_indices = @transform_0, window_bounds = array<i64: 1>}, {transform_indices = @transform_1, window_bounds = array<i64: 8, 512>}, {transform_indices = @transform_2, window_bounds = array<i64: 8, 512>}]} {
    %c0 = arith.constant 0 : index
    %0 = memref.load %arg1[%c0] : memref<1xf32, #tpu.memory_space<smem>>
    %c0_0 = arith.constant 0 : index
    %c0_1 = arith.constant 0 : index
    %1 = vector.load %arg2[%c0_0, %c0_1] : memref<8x512xf32, #tpu.memory_space<vmem>>, vector<8x512xf32>
    %2 = vector.broadcast %0 : f32 to vector<8x512xf32>
    %3 = arith.subf %1, %2 : vector<8x512xf32>
    %c0_2 = arith.constant 0 : index
    %c0_3 = arith.constant 0 : index
    %4 = vector.load %arg3[%c0_2, %c0_3] : memref<8x512xf32, #tpu.memory_space<vmem>>, vector<8x512xf32>
    tpu.vector_store %arg3[%c0_2, %c0_3], %3 {strides = array<i32>} : memref<8x512xf32, #tpu.memory_space<vmem>>, vector<8x512xf32>,
    return
  }
  func.func @transform_0(%arg0: i32) -> i32 {
    %c0_i32 = arith.constant 0 : i32
    %c0_i32_0 = arith.constant 0 : i32
    return %c0_i32 : i32
  }
  func.func @transform_1(%arg0: i32) -> (i32, i32) {
    %c0_i32 = arith.constant 0 : i32
    %c0_i32_0 = arith.constant 0 : i32
    return %arg0, %c0_i32 : i32, i32
  }
  func.func @transform_2(%arg0: i32) -> (i32, i32) {
    %c0_i32 = arith.constant 0 : i32
    %c0_i32_0 = arith.constant 0 : i32
    return %arg0, %c0_i32 : i32, i32
  }
}

</mosaic_0001>

<bundles_post_ra>
// kernel: tpu_custom_call.1
= control target key start
LH: loop header
LB: loop body
LE: loop exit
PB: predicated region body
PF: predicated region fallthrough
CT: control target
= control target key end

     0   :  { %8 = vsyncpa [#allocation4], 0  ;;  %s146_s0 = inlined_call_operand.<no memory space> [shape: f32[1], index: 0, kind: input, shape index: {}]   ;;  %s147_s1 = inlined_call_operand.hbm [shape: f32[4,512], index: 1, kind: input, shape index: {}]   ;;  %s148_s2 = inlined_call_operand.hbm [shape: f32[4,512], index: 2, kind: output, shape index: {}]  }
   0x1   :  { %9 = vsyncpa [#allocation5], 0 }
   0x2   :  { %15 = vsyncadd [#allocation4], 256  ;;  %s16_s11 = sshll.u32 %s147_s1, 4  ;;  %s118_s12 = smov [#allocation3]   ;;  %s17_s11 = int_to_ptr.hbm [resolvable:$true] %s16_s11 }
   0x3   :  { %s18_s13 = sshll.u32 %s118_s12, 4  ;;  %s119_s14 = smov 256   ;;  %s19_s13 = int_to_ptr.vmem [resolvable:$true] %s18_s13 }
   0x4   :  { %s120_s15 = smov 16  }
   0x5   :  { %24 = dma.hbm_to_vmem [thread:$0]  %s17_s11, 256, %s19_s13, [#allocation4], %s119_s14, %s119_s14, %s120_s15  }
   0x6   :  { %114 = dma.done.wait [#allocation4], 512  }
   0x7   :  { %115 = vsyncadd [#allocation4], 4294966784  ;;  %v34_v0 = vstv %s146_s0  ;;  %v30_v1 = vld [vmem:[#allocation3] sm:$0xff]  ;;  %v31_v2 = vld [vmem:[#allocation3 + $0x8] sm:$0xff] }
   0x8   :  { %v32_v3 = vld [vmem:[#allocation3 + $0x10] sm:$0xff]  ;;  %v35_v4 = vsub.f32 %v30_v1, %v34_v0  ;;  %v36_v5 = vsub.f32 %v31_v2, %v34_v0  ;;  %v33_v7 = vld [vmem:[#allocation3 + $0x18] sm:$0xff] }
   0x9   :  { %v37_v6 = vsub.f32 %v32_v3, %v34_v0  ;;  %v38_v8 = vsub.f32 %v33_v7, %v34_v0 }
   0xa   :  { %39 = vst [vmem:[#allocation6] sm:$0xff] %v35_v4 }
   0xb   :  { %40 = vst [vmem:[#allocation6 + $0x8] sm:$0xff] %v36_v5 }
   0xc   :  { %41 = vst [vmem:[#allocation6 + $0x10] sm:$0xff] %v37_v6 }
   0xd   :  { %42 = vst [vmem:[#allocation6 + $0x18] sm:$0xff] %v38_v8 }
   0xe   :  { %46 = vsyncadd [#allocation5], 256  ;;  %s49_s19 = sshll.u32 %s148_s2, 4  ;;  %s121_s20 = smov [#allocation6]   ;;  %s50_s19 = int_to_ptr.hbm [resolvable:$true] %s49_s19 }
   0xf   :  { %s47_s21 = sshll.u32 %s121_s20, 4  ;;  %s48_s21 = int_to_ptr.vmem [resolvable:$true] %s47_s21 }
  0x10   :  { %55 = dma.vmem_to_hbm [thread:$0]  %s48_s21, 256, %s50_s19, [#allocation5], %s119_s14, %s119_s14, %s120_s15  }
  0x11   :  { %116 = dma.done.wait [#allocation5], 512  }
  0x12   :  { %117 = vsyncadd [#allocation5], 4294966784 }
  0x13   :  { %60 = vsyncpa [#allocation4], 1 }
  0x14   :  { %61 = vsyncpa [#allocation5], 1 }

</bundles_post_ra>
